<compile_context>
chip_gen: v6e
topology: v6e:2x2x1
jax: 0.10.0
libtpu: 0.0.40
codegen_flags: <defaults>
</compile_context>

<pallas_src>
import jax
import jax.numpy as jnp
from jax import lax
from jax.experimental import pallas as pl
from jax.experimental.pallas import tpu as pltpu

LN_EPS = 1e-5      # torch.nn.LayerNorm default eps
NORM_EPS = 1e-12   # torch F.normalize default eps


def _project_and_normalize(x, w1, w2, gamma, beta):
    """x @ W1^T @ W2^T -> LayerNorm -> L2 normalize (dropout = identity)."""
    e = jnp.dot(x, w1, preferred_element_type=jnp.float32)    # (B, J)
    e = jnp.dot(e, w2, preferred_element_type=jnp.float32)    # (B, J)
    # LayerNorm over last dim (biased variance, like torch); rsqrt -> EUP.
    mean = jnp.mean(e, axis=-1, keepdims=True)
    cen = e - mean
    var = jnp.mean(cen * cen, axis=-1, keepdims=True)
    e = cen * lax.rsqrt(var + LN_EPS) * gamma + beta
    # F.normalize(dim=-1): x / max(||x||, eps) == x * rsqrt(max(||x||^2, eps^2))
    sq = jnp.sum(e * e, axis=-1, keepdims=True)
    return e * lax.rsqrt(jnp.maximum(sq, NORM_EPS * NORM_EPS))


def clip_loss_kernel(x1_ref, x2_ref,
                     w11_ref, w12_ref, g1_ref, b1_ref,
                     w21_ref, w22_ref, g2_ref, b2_ref,
                     ls_ref, out_ref):
    z1 = _project_and_normalize(x1_ref[...], w11_ref[...], w12_ref[...],
                                g1_ref[...], b1_ref[...])
    z2 = _project_and_normalize(x2_ref[...], w21_ref[...], w22_ref[...],
                                g2_ref[...], b2_ref[...])

    # exp(logit_scale) in-kernel; fold the temperature into z1 once so the
    # logits tile, its transpose view and the diagonal need no extra scaling.
    scale = jnp.exp(ls_ref[...])                               # (1, 1)
    z1s = z1 * scale                                           # (B, J)

    B = z1.shape[0]

    # Single (B,B) MXU matmul; contract feature dim directly (no z2.T relayout).
    dims = (((1,), (1,)), ((), ()))
    logits = lax.dot_general(z1s, z2, dims,
                             preferred_element_type=jnp.float32)   # (B, B)

    # Correct-class logits: diag_i = scale * <z1_i, z2_i>; shared by both terms.
    diag = jnp.sum(z1s * z2, axis=-1, keepdims=True)               # (B, 1)

    # cross_entropy(logits, arange(B)):   row logsumexp (lane-dense).
    m_r = jnp.max(logits, axis=-1, keepdims=True)
    lse_r = m_r + jnp.log(jnp.sum(jnp.exp(logits - m_r), axis=-1, keepdims=True))

    # cross_entropy(logits.T, arange(B)): column logsumexp from the SAME tile
    # via sublane-axis reductions — no second matmul, no second (B,B) buffer.
    m_c = jnp.max(logits, axis=0, keepdims=True)                   # (1, B)
    lse_c = m_c + jnp.log(jnp.sum(jnp.exp(logits - m_c), axis=0, keepdims=True))

    loss = (jnp.sum(lse_r) + jnp.sum(lse_c) - 2.0 * jnp.sum(diag)) * (0.5 / B)
    out_ref[0, 0] = loss


@jax.jit
def clip_loss(latent_s1, latent_s2, params):
    """Entire forward runs in one pallas_call; the wrapper adds no XLA ops."""
    vmem = pl.BlockSpec(memory_space=pltpu.MemorySpace.VMEM)
    smem = pl.BlockSpec(memory_space=pltpu.MemorySpace.SMEM)

    out = pl.pallas_call(
        clip_loss_kernel,
        out_shape=jax.ShapeDtypeStruct((1, 1), jnp.float32),
        in_specs=[vmem, vmem,                    # x1, x2
                  vmem, vmem, vmem, vmem,        # W_S1_1^T, W_S1_2^T, gamma1, beta1
                  vmem, vmem, vmem, vmem,        # W_S2_1^T, W_S2_2^T, gamma2, beta2
                  vmem],                         # logit_scale (exp'd in-kernel)
        out_specs=smem,
    )(latent_s1, latent_s2,
      params["w11_t"], params["w12_t"], params["gamma1"], params["beta1"],
      params["w21_t"], params["w22_t"], params["gamma2"], params["beta2"],
      params["logit_scale"])
    return out[0, 0]


def _reference(latent_s1, latent_s2, params):
    """Pure-JAX reference of the original (unfused) forward."""
    def proj(x, w1, w2, g, b):
        e = x @ w1 @ w2
        mean = jnp.mean(e, axis=-1, keepdims=True)
        var = jnp.mean((e - mean) ** 2, axis=-1, keepdims=True)
        e = (e - mean) / jnp.sqrt(var + LN_EPS) * g + b
        nrm = jnp.sqrt(jnp.sum(e * e, axis=-1, keepdims=True))
        return e / jnp.maximum(nrm, NORM_EPS)

    z1 = proj(latent_s1, params["w11_t"], params["w12_t"],
              params["gamma1"], params["beta1"])
    z2 = proj(latent_s2, params["w21_t"], params["w22_t"],
              params["gamma2"], params["beta2"])
    logits = z1 @ z2.T * jnp.exp(params["logit_scale"][0, 0])
    labels = jnp.arange(logits.shape[0])
    lse_r = jax.scipy.special.logsumexp(logits, axis=-1)
    lse_c = jax.scipy.special.logsumexp(logits, axis=0)
    diag = logits[labels, labels]
    return 0.5 * (jnp.mean(lse_r - diag) + jnp.mean(lse_c - diag))


if __name__ == "__main__":
    # Small but lane-aligned shapes (feature dims multiple of 128, batch a
    # multiple of 8) so vregs / stores are not masked partial tiles.
    B, LATENT, JOINT = 8, 128, 128

    key = jax.random.PRNGKey(0)
    k = jax.random.split(key, 6)

    # nn.Linear(in, out, bias=False) weight is (out, in); we store W^T = (in, out).
    w11_t = jax.random.normal(k[0], (LATENT, JOINT), jnp.float32) * 0.1
    w12_t = jax.random.normal(k[1], (JOINT, JOINT), jnp.float32) * 0.1
    w21_t = jax.random.normal(k[2], (LATENT, JOINT), jnp.float32) * 0.1
    w22_t = jax.random.normal(k[3], (JOINT, JOINT), jnp.float32) * 0.1
    params = dict(
        w11_t=w11_t, w12_t=w12_t,
        gamma1=jnp.ones((1, JOINT), jnp.float32),
        beta1=jnp.zeros((1, JOINT), jnp.float32),
        w21_t=w21_t, w22_t=w22_t,
        gamma2=jnp.ones((1, JOINT), jnp.float32),
        beta2=jnp.zeros((1, JOINT), jnp.float32),
        # Module init: logit_scale = 1/0.07 (exponentiated in forward).
        logit_scale=jnp.full((1, 1), 1.0 / 0.07, jnp.float32),
    )

    latent_s1 = jax.random.normal(k[4], (B, LATENT), jnp.float32)
    latent_s2 = jax.random.normal(k[5], (B, LATENT), jnp.float32)

    loss = jax.block_until_ready(clip_loss(latent_s1, latent_s2, params))
    ref = jax.block_until_ready(_reference(latent_s1, latent_s2, params))
    assert jnp.allclose(loss, ref, rtol=1e-3, atol=1e-3), (loss, ref)
    print("KERNEL_OK")
</pallas_src>

<mosaic_0001>
module attributes {stable_mosaic.version = 11 : i64} {
  func.func @clip_loss_kernel(%arg0: memref<8x128xf32, #tpu.memory_space<vmem>>, %arg1: memref<8x128xf32, #tpu.memory_space<vmem>>, %arg2: memref<128x128xf32, #tpu.memory_space<vmem>>, %arg3: memref<128x128xf32, #tpu.memory_space<vmem>>, %arg4: memref<1x128xf32, #tpu.memory_space<vmem>>, %arg5: memref<1x128xf32, #tpu.memory_space<vmem>>, %arg6: memref<128x128xf32, #tpu.memory_space<vmem>>, %arg7: memref<128x128xf32, #tpu.memory_space<vmem>>, %arg8: memref<1x128xf32, #tpu.memory_space<vmem>>, %arg9: memref<1x128xf32, #tpu.memory_space<vmem>>, %arg10: memref<1x1xf32, #tpu.memory_space<vmem>>, %arg11: memref<1x1xf32, #tpu.memory_space<smem>>) attributes {dimension_semantics = [], scalar_prefetch = 0 : i64, scratch_operands = 0 : i64, tpu.core_type = #tpu.core_type<tc>} {
    %c0 = arith.constant 0 : index
    %c0_0 = arith.constant 0 : index
    %0 = vector.load %arg0[%c0, %c0_0] : memref<8x128xf32, #tpu.memory_space<vmem>>, vector<8x128xf32>
    %c0_1 = arith.constant 0 : index
    %c0_2 = arith.constant 0 : index
    %1 = vector.load %arg2[%c0_1, %c0_2] : memref<128x128xf32, #tpu.memory_space<vmem>>, vector<128x128xf32>
    %c0_3 = arith.constant 0 : index
    %c0_4 = arith.constant 0 : index
    %2 = vector.load %arg3[%c0_3, %c0_4] : memref<128x128xf32, #tpu.memory_space<vmem>>, vector<128x128xf32>
    %c0_5 = arith.constant 0 : index
    %c0_6 = arith.constant 0 : index
    %3 = vector.load %arg4[%c0_5, %c0_6] : memref<1x128xf32, #tpu.memory_space<vmem>>, vector<1x128xf32>
    %c0_7 = arith.constant 0 : index
    %c0_8 = arith.constant 0 : index
    %4 = vector.load %arg5[%c0_7, %c0_8] : memref<1x128xf32, #tpu.memory_space<vmem>>, vector<1x128xf32>
    %cst = arith.constant dense<0.000000e+00> : vector<8x128xf32>
    %5 = tpu.matmul %0, %1, %cst {dimension_numbers = #tpu.dot_dimension_numbers<[1], [0], [0], [1], [0, 0, 1, 1], [], []>} : vector<8x128xf32>, vector<128x128xf32>, vector<8x128xf32> -> vector<8x128xf32>
    %cst_9 = arith.constant dense<0.000000e+00> : vector<8x128xf32>
    %6 = tpu.matmul %5, %2, %cst_9 {dimension_numbers = #tpu.dot_dimension_numbers<[1], [0], [0], [1], [0, 0, 1, 1], [], []>} : vector<8x128xf32>, vector<128x128xf32>, vector<8x128xf32> -> vector<8x128xf32>
    %cst_10 = arith.constant dense<0.000000e+00> : vector<8xf32>
    %7 = vector.multi_reduction <add>, %6, %cst_10 [1] : vector<8x128xf32> to vector<8xf32>
    %8 = vector.shape_cast %7 : vector<8xf32> to vector<8x1xf32>
    %cst_11 = arith.constant 1.280000e+02 : f32
    %9 = vector.broadcast %cst_11 : f32 to vector<8x1xf32>
    %10 = arith.divf %8, %9 : vector<8x1xf32>
    %11 = vector.broadcast %10 : vector<8x1xf32> to vector<8x128xf32>
    %12 = arith.subf %6, %11 : vector<8x128xf32>
    %13 = arith.mulf %12, %12 : vector<8x128xf32>
    %cst_12 = arith.constant dense<0.000000e+00> : vector<8xf32>
    %14 = vector.multi_reduction <add>, %13, %cst_12 [1] : vector<8x128xf32> to vector<8xf32>
    %15 = vector.shape_cast %14 : vector<8xf32> to vector<8x1xf32>
    %cst_13 = arith.constant 1.280000e+02 : f32
    %16 = vector.broadcast %cst_13 : f32 to vector<8x1xf32>
    %17 = arith.divf %15, %16 : vector<8x1xf32>
    %cst_14 = arith.constant 9.99999974E-6 : f32
    %18 = vector.broadcast %cst_14 : f32 to vector<8x1xf32>
    %19 = arith.addf %17, %18 : vector<8x1xf32>
    %20 = math.rsqrt %19 : vector<8x1xf32>
    %21 = vector.broadcast %20 : vector<8x1xf32> to vector<8x128xf32>
    %22 = arith.mulf %12, %21 : vector<8x128xf32>
    %23 = vector.broadcast %3 : vector<1x128xf32> to vector<8x128xf32>
    %24 = arith.mulf %22, %23 : vector<8x128xf32>
    %25 = vector.broadcast %4 : vector<1x128xf32> to vector<8x128xf32>
    %26 = arith.addf %24, %25 : vector<8x128xf32>
    %27 = arith.mulf %26, %26 : vector<8x128xf32>
    %cst_15 = arith.constant dense<0.000000e+00> : vector<8xf32>
    %28 = vector.multi_reduction <add>, %27, %cst_15 [1] : vector<8x128xf32> to vector<8xf32>
    %29 = vector.shape_cast %28 : vector<8xf32> to vector<8x1xf32>
    %cst_16 = arith.constant 1.000000e-24 : f32
    %30 = vector.broadcast %cst_16 : f32 to vector<8x1xf32>
    %31 = arith.maximumf %29, %30 : vector<8x1xf32>
    %32 = math.rsqrt %31 : vector<8x1xf32>
    %33 = vector.broadcast %32 : vector<8x1xf32> to vector<8x128xf32>
    %34 = arith.mulf %26, %33 : vector<8x128xf32>
    %c0_17 = arith.constant 0 : index
    %c0_18 = arith.constant 0 : index
    %35 = vector.load %arg1[%c0_17, %c0_18] : memref<8x128xf32, #tpu.memory_space<vmem>>, vector<8x128xf32>
    %c0_19 = arith.constant 0 : index
    %c0_20 = arith.constant 0 : index
    %36 = vector.load %arg6[%c0_19, %c0_20] : memref<128x128xf32, #tpu.memory_space<vmem>>, vector<128x128xf32>
    %c0_21 = arith.constant 0 : index
    %c0_22 = arith.constant 0 : index
    %37 = vector.load %arg7[%c0_21, %c0_22] : memref<128x128xf32, #tpu.memory_space<vmem>>, vector<128x128xf32>
    %c0_23 = arith.constant 0 : index
    %c0_24 = arith.constant 0 : index
    %38 = vector.load %arg8[%c0_23, %c0_24] : memref<1x128xf32, #tpu.memory_space<vmem>>, vector<1x128xf32>
    %c0_25 = arith.constant 0 : index
    %c0_26 = arith.constant 0 : index
    %39 = vector.load %arg9[%c0_25, %c0_26] : memref<1x128xf32, #tpu.memory_space<vmem>>, vector<1x128xf32>
    %cst_27 = arith.constant dense<0.000000e+00> : vector<8x128xf32>
    %40 = tpu.matmul %35, %36, %cst_27 {dimension_numbers = #tpu.dot_dimension_numbers<[1], [0], [0], [1], [0, 0, 1, 1], [], []>} : vector<8x128xf32>, vector<128x128xf32>, vector<8x128xf32> -> vector<8x128xf32>
    %cst_28 = arith.constant dense<0.000000e+00> : vector<8x128xf32>
    %41 = tpu.matmul %40, %37, %cst_28 {dimension_numbers = #tpu.dot_dimension_numbers<[1], [0], [0], [1], [0, 0, 1, 1], [], []>} : vector<8x128xf32>, vector<128x128xf32>, vector<8x128xf32> -> vector<8x128xf32>
    %cst_29 = arith.constant dense<0.000000e+00> : vector<8xf32>
    %42 = vector.multi_reduction <add>, %41, %cst_29 [1] : vector<8x128xf32> to vector<8xf32>
    %43 = vector.shape_cast %42 : vector<8xf32> to vector<8x1xf32>
    %cst_30 = arith.constant 1.280000e+02 : f32
    %44 = vector.broadcast %cst_30 : f32 to vector<8x1xf32>
    %45 = arith.divf %43, %44 : vector<8x1xf32>
    %46 = vector.broadcast %45 : vector<8x1xf32> to vector<8x128xf32>
    %47 = arith.subf %41, %46 : vector<8x128xf32>
    %48 = arith.mulf %47, %47 : vector<8x128xf32>
    %cst_31 = arith.constant dense<0.000000e+00> : vector<8xf32>
    %49 = vector.multi_reduction <add>, %48, %cst_31 [1] : vector<8x128xf32> to vector<8xf32>
    %50 = vector.shape_cast %49 : vector<8xf32> to vector<8x1xf32>
    %cst_32 = arith.constant 1.280000e+02 : f32
    %51 = vector.broadcast %cst_32 : f32 to vector<8x1xf32>
    %52 = arith.divf %50, %51 : vector<8x1xf32>
    %cst_33 = arith.constant 9.99999974E-6 : f32
    %53 = vector.broadcast %cst_33 : f32 to vector<8x1xf32>
    %54 = arith.addf %52, %53 : vector<8x1xf32>
    %55 = math.rsqrt %54 : vector<8x1xf32>
    %56 = vector.broadcast %55 : vector<8x1xf32> to vector<8x128xf32>
    %57 = arith.mulf %47, %56 : vector<8x128xf32>
    %58 = vector.broadcast %38 : vector<1x128xf32> to vector<8x128xf32>
    %59 = arith.mulf %57, %58 : vector<8x128xf32>
    %60 = vector.broadcast %39 : vector<1x128xf32> to vector<8x128xf32>
    %61 = arith.addf %59, %60 : vector<8x128xf32>
    %62 = arith.mulf %61, %61 : vector<8x128xf32>
    %cst_34 = arith.constant dense<0.000000e+00> : vector<8xf32>
    %63 = vector.multi_reduction <add>, %62, %cst_34 [1] : vector<8x128xf32> to vector<8xf32>
    %64 = vector.shape_cast %63 : vector<8xf32> to vector<8x1xf32>
    %cst_35 = arith.constant 1.000000e-24 : f32
    %65 = vector.broadcast %cst_35 : f32 to vector<8x1xf32>
    %66 = arith.maximumf %64, %65 : vector<8x1xf32>
    %67 = math.rsqrt %66 : vector<8x1xf32>
    %68 = vector.broadcast %67 : vector<8x1xf32> to vector<8x128xf32>
    %69 = arith.mulf %61, %68 : vector<8x128xf32>
    %c0_36 = arith.constant 0 : index
    %c0_37 = arith.constant 0 : index
    %70 = vector.load %arg10[%c0_36, %c0_37] : memref<1x1xf32, #tpu.memory_space<vmem>>, vector<1x1xf32>
    %71 = math.exp %70 : vector<1x1xf32>
    %72 = vector.broadcast %71 : vector<1x1xf32> to vector<8x128xf32>
    %73 = arith.mulf %34, %72 : vector<8x128xf32>
    %cst_38 = arith.constant dense<0.000000e+00> : vector<8x8xf32>
    %74 = tpu.matmul %73, %69, %cst_38 {dimension_numbers = #tpu.dot_dimension_numbers<[1], [1], [0], [0], [0, 0, 1, 0], [], []>} : vector<8x128xf32>, vector<8x128xf32>, vector<8x8xf32> -> vector<8x8xf32>
    %75 = arith.mulf %73, %69 : vector<8x128xf32>
    %cst_39 = arith.constant dense<0.000000e+00> : vector<8xf32>
    %76 = vector.multi_reduction <add>, %75, %cst_39 [1] : vector<8x128xf32> to vector<8xf32>
    %77 = vector.shape_cast %76 : vector<8xf32> to vector<8x1xf32>
    %cst_40 = arith.constant dense<0xFF800000> : vector<8xf32>
    %78 = vector.multi_reduction <maximumf>, %74, %cst_40 [1] : vector<8x8xf32> to vector<8xf32>
    %79 = vector.shape_cast %78 : vector<8xf32> to vector<8x1xf32>
    %80 = vector.broadcast %79 : vector<8x1xf32> to vector<8x8xf32>
    %81 = arith.subf %74, %80 : vector<8x8xf32>
    %82 = math.exp %81 : vector<8x8xf32>
    %cst_41 = arith.constant dense<0.000000e+00> : vector<8xf32>
    %83 = vector.multi_reduction <add>, %82, %cst_41 [1] : vector<8x8xf32> to vector<8xf32>
    %84 = vector.shape_cast %83 : vector<8xf32> to vector<8x1xf32>
    %85 = math.log %84 : vector<8x1xf32>
    %86 = arith.addf %79, %85 : vector<8x1xf32>
    %cst_42 = arith.constant dense<0xFF800000> : vector<8xf32>
    %87 = vector.multi_reduction <maximumf>, %74, %cst_42 [0] : vector<8x8xf32> to vector<8xf32>
    %88 = vector.shape_cast %87 : vector<8xf32> to vector<1x8xf32>
    %89 = vector.broadcast %88 : vector<1x8xf32> to vector<8x8xf32>
    %90 = arith.subf %74, %89 : vector<8x8xf32>
    %91 = math.exp %90 : vector<8x8xf32>
    %cst_43 = arith.constant dense<0.000000e+00> : vector<8xf32>
    %92 = vector.multi_reduction <add>, %91, %cst_43 [0] : vector<8x8xf32> to vector<8xf32>
    %93 = vector.shape_cast %92 : vector<8xf32> to vector<1x8xf32>
    %94 = math.log %93 : vector<1x8xf32>
    %95 = arith.addf %88, %94 : vector<1x8xf32>
    %96 = vector.shape_cast %86 : vector<8x1xf32> to vector<1x8x1xf32>
    %cst_44 = arith.constant dense<0.000000e+00> : vector<1xf32>
    %97 = vector.multi_reduction <add>, %96, %cst_44 [1, 2] : vector<1x8x1xf32> to vector<1xf32>
    %98 = vector.shape_cast %97 : vector<1xf32> to vector<1x1x1xf32>
    %99 = vector.extract %98[0, 0, 0] : f32 from vector<1x1x1xf32>
    %100 = vector.shape_cast %95 : vector<1x8xf32> to vector<1x1x8xf32>
    %cst_45 = arith.constant dense<0.000000e+00> : vector<1xf32>
    %101 = vector.multi_reduction <add>, %100, %cst_45 [1, 2] : vector<1x1x8xf32> to vector<1xf32>
    %102 = vector.shape_cast %101 : vector<1xf32> to vector<1x1x1xf32>
    %103 = vector.extract %102[0, 0, 0] : f32 from vector<1x1x1xf32>
    %104 = arith.addf %99, %103 : f32
    %105 = vector.shape_cast %77 : vector<8x1xf32> to vector<1x8x1xf32>
    %cst_46 = arith.constant dense<0.000000e+00> : vector<1xf32>
    %106 = vector.multi_reduction <add>, %105, %cst_46 [1, 2] : vector<1x8x1xf32> to vector<1xf32>
    %107 = vector.shape_cast %106 : vector<1xf32> to vector<1x1x1xf32>
    %108 = vector.extract %107[0, 0, 0] : f32 from vector<1x1x1xf32>
    %cst_47 = arith.constant 2.000000e+00 : f32
    %109 = arith.mulf %cst_47, %108 : f32
    %110 = arith.subf %104, %109 : f32
    %cst_48 = arith.constant 6.250000e-02 : f32
    %111 = arith.mulf %110, %cst_48 : f32
    %c0_49 = arith.constant 0 : index
    %c0_50 = arith.constant 0 : index
    %112 = memref.load %arg11[%c0_49, %c0_50] : memref<1x1xf32, #tpu.memory_space<smem>>
    memref.store %111, %arg11[%c0_49, %c0_50] : memref<1x1xf32, #tpu.memory_space<smem>>
    return
  }
}

</mosaic_0001>

<bundles_post_ra>
// kernel: clip_loss.1
= control target key start
LH: loop header
LB: loop body
LE: loop exit
PB: predicated region body
PF: predicated region fallthrough
CT: control target
= control target key end

     0   :  { %s1297_s0 = inlined_call_operand.hbm [shape: f32[8,128], index: 0, kind: input, shape index: {}]   ;;  %s1298_s1 = inlined_call_operand.hbm [shape: f32[8,128], index: 1, kind: input, shape index: {}]   ;;  %s1299_s2 = inlined_call_operand.hbm [shape: f32[128,128], index: 2, kind: input, shape index: {}]   ;;  %s1300_s3 = inlined_call_operand.hbm [shape: f32[128,128], index: 3, kind: input, shape index: {}]   ;;  %s1301_s4 = inlined_call_operand.vmem [shape: f32[1,128], index: 4, kind: input, shape index: {}]   ;;  %s1302_s5 = inlined_call_operand.vmem [shape: f32[1,128], index: 5, kind: input, shape index: {}]   ;;  %s1303_s6 = inlined_call_operand.hbm [shape: f32[128,128], index: 6, kind: input, shape index: {}]   ;;  %s1304_s7 = inlined_call_operand.hbm [shape: f32[128,128], index: 7, kind: input, shape index: {}]   ;;  %s1305_s8 = inlined_call_operand.vmem [shape: f32[1,128], index: 8, kind: input, shape index: {}]   ;;  %s1306_s9 = inlined_call_operand.vmem [shape: f32[1,128], index: 9, kind: input, shape index: {}]   ;;  %s1307_s10 = inlined_call_operand.<no memory space> [shape: f32[1,1], index: 10, kind: input, shape index: {}]   ;;  %s1308_s11 = inlined_call_operand.hbm [shape: f32[1,1], index: 11, kind: output, shape index: {}]  }
   0x1   :  { %v16_v0 = vstv %s1307_s10 }
   0x2   :  { %17 = vst [vmem:[#allocation2] sm:$0x1] %v16_v0 }
   0x3   :  { %18 = vsyncpa [#allocation4], 0 }
   0x4   :  { %19 = vsyncpa [#allocation7], 0 }
   0x5   :  { %20 = vsyncpa [#allocation10], 0 }
   0x6   :  { %21 = vsyncpa [#allocation13], 0 }
   0x7   :  { %22 = vsyncpa [#allocation5], 0  ;;  %s1099_s19 = smov [#allocation6]  }
   0x8   :  { %s39_s20 = sshll.u32 %s1099_s19, 4  ;;  %s40_s20 = int_to_ptr.vmem [resolvable:$true] %s39_s20 }
   0x9   :  { %s969_s21 = scalar_lea.vmem %s40_s20, 128  ;;  %p974_p1 = scmp.lt.s32.totalorder %s40_s20, %s40_s20 }
   0xa   :  { %p970_p0 = scmp.ne.s32.totalorder %s40_s20, %s969_s21  ;;  %p975_p2 = scmp.lt.s32.totalorder %s969_s21, %s969_s21 }
   0xc   :  { %p976_p3 = por %p975_p2, %p974_p1 }
   0xe   :  { %p977_p4 = pnand %p976_p3, %p970_p0 }
  0x10   :  { %980 = shalt.err (!%p977_p4)
}
  0x11   :  { %42 = dma.hbm_to_vmem [thread:$0]  %s1298_s1, 128, %s40_s20, [#allocation7]  }
  0x12   :  { %s1100_s10 = smov [#allocation9]   ;;  %s1101_s25 = smov [#allocation3]  }
  0x13   :  { %s60_s24 = sshll.u32 %s1100_s10, 4  ;;  %s29_s26 = sshll.u32 %s1101_s25, 4  ;;  %s61_s24 = int_to_ptr.vmem [resolvable:$true] %s60_s24  ;;  %s30_s26 = int_to_ptr.vmem [resolvable:$true] %s29_s26 }
  0x14   :  { %s989_s27 = scalar_lea.vmem %s61_s24, 2048  ;;  %p994_p6 = scmp.lt.s32.totalorder %s61_s24, %s61_s24 }
  0x15   :  { %p990_p5 = scmp.ne.s32.totalorder %s61_s24, %s989_s27  ;;  %p995_p7 = scmp.lt.s32.totalorder %s989_s27, %s989_s27 }
  0x17   :  { %p996_p8 = por %p995_p7, %p994_p6 }
  0x19   :  { %p997_p9 = pnand %p996_p8, %p990_p5 }
  0x1b   :  { %1000 = shalt.err (!%p997_p9)
}
  0x1c   :  { %s1102_s28 = smov 128   ;;  %s1103_s29 = smov 8  }
  0x1d   :  { %66 = dma.hbm_to_vmem [thread:$0]  %s1300_s3, 2048, %s61_s24, [#allocation10], %s1102_s28, %s1102_s28, %s1103_s29  }
  0x1e   :  { %s1009_s1 = scalar_lea.vmem %s30_s26, 128  ;;  %p1014_p11 = scmp.lt.s32.totalorder %s30_s26, %s30_s26 }
  0x1f   :  { %p1010_p10 = scmp.ne.s32.totalorder %s30_s26, %s1009_s1  ;;  %p1015_p12 = scmp.lt.s32.totalorder %s1009_s1, %s1009_s1 }
  0x21   :  { %p1016_p13 = por %p1015_p12, %p1014_p11 }
  0x23   :  { %p1017_p0 = pnand %p1016_p13, %p1010_p10 }
  0x25   :  { %1020 = shalt.err (!%p1017_p0)
}
  0x26   :  { %32 = dma.hbm_to_vmem [thread:$0]  %s1297_s0, 128, %s30_s26, [#allocation4]  }
  0x27   :  { %s1104_s15 = smov [#allocation8]   ;;  %s1105_s17 = smov [#allocation11]  }
  0x28   :  { %s48_s16 = sshll.u32 %s1104_s15, 4  ;;  %s76_s18 = sshll.u32 %s1105_s17, 4  ;;  %s49_s16 = int_to_ptr.vmem [resolvable:$true] %s48_s16  ;;  %s77_s18 = int_to_ptr.vmem [resolvable:$true] %s76_s18 }
  0x29   :  { %s1029_s19 = scalar_lea.vmem %s49_s16, 2048  ;;  %p1034_p2 = scmp.lt.s32.totalorder %s49_s16, %s49_s16 }
  0x2a   :  { %p1030_p1 = scmp.ne.s32.totalorder %s49_s16, %s1029_s19  ;;  %p1035_p3 = scmp.lt.s32.totalorder %s1029_s19, %s1029_s19 }
  0x2c   :  { %p1036_p4 = por %p1035_p3, %p1034_p2 }
  0x2e   :  { %p1037_p5 = pnand %p1036_p4, %p1030_p1 }
  0x30   :  { %1040 = shalt.err (!%p1037_p5)
}
  0x31   :  { %54 = dma.hbm_to_vmem [thread:$0]  %s1299_s2, 2048, %s49_s16, [#allocation7], %s1102_s28, %s1102_s28, %s1103_s29  }
  0x32   :  { %s1049_s0 = scalar_lea.vmem %s77_s18, 2048  ;;  %p1054_p7 = scmp.lt.s32.totalorder %s77_s18, %s77_s18 }
  0x33   :  { %p1050_p6 = scmp.ne.s32.totalorder %s77_s18, %s1049_s0  ;;  %p1055_p8 = scmp.lt.s32.totalorder %s1049_s0, %s1049_s0 }
  0x35   :  { %p1056_p9 = por %p1055_p8, %p1054_p7 }
  0x37   :  { %p1057_p10 = pnand %p1056_p9, %p1050_p6 }
  0x39   :  { %1060 = shalt.err (!%p1057_p10)
}
  0x3a   :  { %82 = dma.hbm_to_vmem [thread:$0]  %s1303_s6, 2048, %s77_s18, [#allocation10], %s1102_s28, %s1102_s28, %s1103_s29  }
  0x3b   :  { %s1106_s23 = smov [#allocation12]  }
  0x3c   :  { %s88_s10 = sshll.u32 %s1106_s23, 4  ;;  %s89_s10 = int_to_ptr.vmem [resolvable:$true] %s88_s10 }
  0x3d   :  { %s1069_s24 = scalar_lea.vmem %s89_s10, 2048  ;;  %p1074_p12 = scmp.lt.s32.totalorder %s89_s10, %s89_s10 }
  0x3e   :  { %p1070_p11 = scmp.ne.s32.totalorder %s89_s10, %s1069_s24  ;;  %p1075_p13 = scmp.lt.s32.totalorder %s1069_s24, %s1069_s24 }
  0x40   :  { %p1076_p0 = por %p1075_p13, %p1074_p12 }
  0x42   :  { %p1077_p1 = pnand %p1076_p0, %p1070_p11 }
  0x44   :  { %1080 = shalt.err (!%p1077_p1)
}
  0x45   :  { %94 = dma.hbm_to_vmem [thread:$0]  %s1304_s7, 2048, %s89_s10, [#allocation13], %s1102_s28, %s1102_s28, %s1103_s29  }
  0x46   :  { %1089 = dma.done.wait [#allocation4], 128  }
  0x47   :  { %1090 = vsyncadd [#allocation4], 4294967168 }
  0x48   :  { %1091 = dma.done.wait [#allocation7], 2176  }
  0x49   :  { %1092 = vsyncadd [#allocation7], 4294965120 }
  0x4a   :  { %1093 = dma.done.wait [#allocation10], 4096  }
  0x4b   :  { %1094 = vsyncadd [#allocation10], 4294963200 }
  0x4c   :  { %1095 = dma.done.wait [#allocation13], 2048  }
  0x4d   :  { %1096 = vsyncadd [#allocation13], 4294965248  ;;  %v1107_v1 = vmov 0.0   ;;  %vm1108_vm0 = vmmov 0   ;;  %v135_v2 = vld [vmem:[#allocation8 + $0x78] sm:$0xff]  ;;  %v134_v3 = vld [vmem:[#allocation8 + $0x70] sm:$0xff] }
  0x4e   :  { %779 = vmatprep.subr.mxu0 %v1107_v1  ;;  %811 = vmatprep.mubr.msk.f32.mxu0 %vm1108_vm0, %v1107_v1  ;;  %v133_v4 = vld [vmem:[#allocation8 + $0x68] sm:$0xff]  ;;  %v132_v5 = vld [vmem:[#allocation8 + $0x60] sm:$0xff]  ;;  %v131_v6 = vld [vmem:[#allocation8 + $0x58] sm:$0xff]  ;;  %vm618_vm1 = vcmask 64512   ;;  %vm661_vm2 = vcmask 57344   ;;  %vm650_vm3 = vcmask 7168  }
  0x4f   :  { %814 = vmatprep.subr.mxu1 %v1107_v1  ;;  %846 = vmatprep.mubr.msk.f32.mxu1 %vm1108_vm0, %v1107_v1  ;;  %v130_v7 = vld [vmem:[#allocation8 + $0x50] sm:$0xff]  ;;  %v129_v8 = vld [vmem:[#allocation8 + $0x48] sm:$0xff]  ;;  %v151_v9 = vld [vmem:[#allocation9 + $0x78] sm:$0xff]  ;;  %s1110_s15 = smov [#allocation14]  }
  0x50   :  { %780 = vmatpush3.msra.mxu0 %v135_v2  ;;  %v150_v10 = vld [vmem:[#allocation9 + $0x70] sm:$0xff]  ;;  %v128_v11 = vld [vmem:[#allocation8 + $0x40] sm:$0xff]  ;;  %815 = vmatpush3.msra.mxu1 %v151_v9  ;;  %v149_v12 = vld [vmem:[#allocation9 + $0x68] sm:$0xff] }
  0x51   :  { %781 = vmatprep.subr.mxu0 %v1107_v1  ;;  %816 = vmatprep.subr.mxu1 %v1107_v1  ;;  %v127_v13 = vld [vmem:[#allocation8 + $0x38] sm:$0xff]  ;;  %v148_v14 = vld [vmem:[#allocation9 + $0x60] sm:$0xff]  ;;  %v126_v15 = vld [vmem:[#allocation8 + $0x30] sm:$0xff] }
  0x52   :  { %782 = vmatpush3.msra.mxu0 %v134_v3  ;;  %817 = vmatpush3.msra.mxu1 %v150_v10  ;;  %v147_v16 = vld [vmem:[#allocation9 + $0x58] sm:$0xff]  ;;  %v125_v17 = vld [vmem:[#allocation8 + $0x28] sm:$0xff]  ;;  %v146_v18 = vld [vmem:[#allocation9 + $0x50] sm:$0xff] }
  0x53   :  { %783 = vmatprep.subr.mxu0 %v1107_v1  ;;  %818 = vmatprep.subr.mxu1 %v1107_v1  ;;  %v124_v19 = vld [vmem:[#allocation8 + $0x20] sm:$0xff]  ;;  %v145_v20 = vld [vmem:[#allocation9 + $0x48] sm:$0xff]  ;;  %v123_v21 = vld [vmem:[#allocation8 + $0x18] sm:$0xff] }
  0x54   :  { %784 = vmatpush3.msra.mxu0 %v133_v4  ;;  %819 = vmatpush3.msra.mxu1 %v149_v12  ;;  %v144_v22 = vld [vmem:[#allocation9 + $0x40] sm:$0xff]  ;;  %v122_v23 = vld [vmem:[#allocation8 + $0x10] sm:$0xff]  ;;  %v143_v24 = vld [vmem:[#allocation9 + $0x38] sm:$0xff] }
  0x55   :  { %785 = vmatprep.subr.mxu0 %v1107_v1  ;;  %820 = vmatprep.subr.mxu1 %v1107_v1  ;;  %v121_v25 = vld [vmem:[#allocation8 + $0x8] sm:$0xff]  ;;  %v142_v26 = vld [vmem:[#allocation9 + $0x30] sm:$0xff]  ;;  %v120_v27 = vld [vmem:[#allocation8] sm:$0xff] }
  0x56   :  { %786 = vmatpush3.msra.mxu0 %v132_v5  ;;  %821 = vmatpush3.msra.mxu1 %v148_v14  ;;  %v119_v28 = vld [vmem:[#allocation3] sm:$0xff]  ;;  %v342_v29 = vld [vmem:[#allocation11 + $0x78] sm:$0xff]  ;;  %v141_v30 = vld [vmem:[#allocation9 + $0x28] sm:$0xff] }
  0x57   :  { %787 = vmatprep.subr.mxu0 %v1107_v1  ;;  %822 = vmatprep.subr.mxu1 %v1107_v1  ;;  %v341_v31 = vld [vmem:[#allocation11 + $0x70] sm:$0xff]  ;;  %v140_v32 = vld [vmem:[#allocation9 + $0x20] sm:$0xff]  ;;  %v340_v33 = vld [vmem:[#allocation11 + $0x68] sm:$0xff] }
  0x58   :  { %788 = vmatpush3.msra.mxu0 %v131_v6  ;;  %823 = vmatpush3.msra.mxu1 %v147_v16  ;;  %v139_v34 = vld [vmem:[#allocation9 + $0x18] sm:$0xff]  ;;  %v339_v35 = vld [vmem:[#allocation11 + $0x60] sm:$0xff]  ;;  %v138_v36 = vld [vmem:[#allocation9 + $0x10] sm:$0xff] }
  0x59   :  { %789 = vmatprep.subr.mxu0 %v1107_v1  ;;  %824 = vmatprep.subr.mxu1 %v1107_v1  ;;  %v338_v37 = vld [vmem:[#allocation11 + $0x58] sm:$0xff]  ;;  %v137_v38 = vld [vmem:[#allocation9 + $0x8] sm:$0xff]  ;;  %v337_v39 = vld [vmem:[#allocation11 + $0x50] sm:$0xff] }
  0x5a   :  { %790 = vmatpush3.msra.mxu0 %v130_v7  ;;  %825 = vmatpush3.msra.mxu1 %v146_v18  ;;  %v336_v40 = vld [vmem:[#allocation11 + $0x48] sm:$0xff]  ;;  %v335_v41 = vld [vmem:[#allocation11 + $0x40] sm:$0xff]  ;;  %v334_v42 = vld [vmem:[#allocation11 + $0x38] sm:$0xff] }
  0x5b   :  { %791 = vmatprep.subr.mxu0 %v1107_v1  ;;  %826 = vmatprep.subr.mxu1 %v1107_v1  ;;  %v333_v43 = vld [vmem:[#allocation11 + $0x30] sm:$0xff]  ;;  %v332_v44 = vld [vmem:[#allocation11 + $0x28] sm:$0xff]  ;;  %v331_v45 = vld [vmem:[#allocation11 + $0x20] sm:$0xff] }
  0x5c   :  { %792 = vmatpush3.msra.mxu0 %v129_v8  ;;  %827 = vmatpush3.msra.mxu1 %v145_v20  ;;  %v330_v46 = vld [vmem:[#allocation11 + $0x18] sm:$0xff]  ;;  %v329_v47 = vld [vmem:[#allocation11 + $0x10] sm:$0xff]  ;;  %v328_v48 = vld [vmem:[#allocation11 + $0x8] sm:$0xff] }
  0x5d   :  { %793 = vmatprep.subr.mxu0 %v1107_v1  ;;  %828 = vmatprep.subr.mxu1 %v1107_v1  ;;  %v327_v49 = vld [vmem:[#allocation11] sm:$0xff]  ;;  %v326_v50 = vld [vmem:[#allocation6] sm:$0xff]  ;;  %v357_v54 = vld [vmem:[#allocation12 + $0x70] sm:$0xff] }
  0x5e   :  { %794 = vmatpush3.msra.mxu0 %v128_v11  ;;  %829 = vmatpush3.msra.mxu1 %v144_v22  ;;  %v136_v51 = vld [vmem:[#allocation9] sm:$0xff]  ;;  %v358_v52 = vld [vmem:[#allocation12 + $0x78] sm:$0xff]  ;;  %v356_v56 = vld [vmem:[#allocation12 + $0x68] sm:$0xff] }
  0x5f   :  { %795 = vmatprep.subr.mxu0 %v1107_v1  ;;  %830 = vmatprep.subr.mxu1 %v1107_v1  ;;  %v355_v57 = vld [vmem:[#allocation12 + $0x60] sm:$0xff]  ;;  %v354_v58 = vld [vmem:[#allocation12 + $0x58] sm:$0xff]  ;;  %v353_v59 = vld [vmem:[#allocation12 + $0x50] sm:$0xff] }
  0x60   :  { %796 = vmatpush3.msra.mxu0 %v127_v13  ;;  %831 = vmatpush3.msra.mxu1 %v143_v24  ;;  %v352_v60 = vld [vmem:[#allocation12 + $0x48] sm:$0xff]  ;;  %v351_v61 = vld [vmem:[#allocation12 + $0x40] sm:$0xff]  ;;  %v350_v62 = vld [vmem:[#allocation12 + $0x38] sm:$0xff] }
  0x61   :  { %797 = vmatprep.subr.mxu0 %v1107_v1  ;;  %832 = vmatprep.subr.mxu1 %v1107_v1  ;;  %v349_v63 = vld [vmem:[#allocation12 + $0x30] sm:$0xff]  ;;  %v348_v0 = vld [vmem:[#allocation12 + $0x28] sm:$0xff]  ;;  %v347_v2 = vld [vmem:[#allocation12 + $0x20] sm:$0xff] }
  0x62   :  { %798 = vmatpush3.msra.mxu0 %v126_v15  ;;  %833 = vmatpush3.msra.mxu1 %v142_v26  ;;  %v346_v3 = vld [vmem:[#allocation12 + $0x18] sm:$0xff]  ;;  %v345_v4 = vld [vmem:[#allocation12 + $0x10] sm:$0xff]  ;;  %v344_v5 = vld [vmem:[#allocation12 + $0x8] sm:$0xff] }
  0x63   :  { %799 = vmatprep.subr.mxu0 %v1107_v1  ;;  %834 = vmatprep.subr.mxu1 %v1107_v1  ;;  %v343_v6 = vld [vmem:[#allocation12] sm:$0xff] }
  0x64   :  { %800 = vmatpush3.msra.mxu0 %v125_v17  ;;  %835 = vmatpush3.msra.mxu1 %v141_v30  ;;  %v708_v30 = vld [vmem:[%s1306_s9] ss:$0 sm:$0xff] }
  0x65   :  { %801 = vmatprep.subr.mxu0 %v1107_v1  ;;  %836 = vmatprep.subr.mxu1 %v1107_v1 }
  0x66   :  { %802 = vmatpush3.msra.mxu0 %v124_v19  ;;  %837 = vmatpush3.msra.mxu1 %v140_v32 }
  0x67   :  { %803 = vmatprep.subr.mxu0 %v1107_v1  ;;  %838 = vmatprep.subr.mxu1 %v1107_v1 }
  0x68   :  { %804 = vmatpush3.msra.mxu0 %v123_v21  ;;  %839 = vmatpush3.msra.mxu1 %v139_v34  ;;  %v532_v34 = vld [vmem:[#allocation2] sm:$0x1] }
  0x69   :  { %805 = vmatprep.subr.mxu0 %v1107_v1  ;;  %840 = vmatprep.subr.mxu1 %v1107_v1 }
  0x6a   :  { %806 = vmatpush3.msra.mxu0 %v122_v23  ;;  %841 = vmatpush3.msra.mxu1 %v138_v36 }
  0x6b   :  { %807 = vmatprep.subr.mxu0 %v1107_v1  ;;  %842 = vmatprep.subr.mxu1 %v1107_v1 }
  0x6c   :  { %808 = vmatpush3.msra.mxu0 %v121_v25  ;;  %843 = vmatpush3.msra.mxu1 %v137_v38 }
  0x6d   :  { %809 = vmatprep.subr.mxu0 %v1107_v1  ;;  %844 = vmatprep.subr.mxu1 %v1107_v1 }
  0x6e   :  { %810 = vmatpush3.msra.mxu0 %v120_v27  ;;  %845 = vmatpush3.msra.mxu1 %v136_v51 }
  0x6f   :  { %812 = vmatmul.mubr.f32.vlgmr.msra.gmra.mxu0 %v119_v28  ;;  %849 = vmatprep.subr.mxu0 %v1107_v1  ;;  %v707_v28 = vld [vmem:[%s1305_s8] ss:$0 sm:$0xff] }
  0x70   :  { %850 = vmatpush3.msra.mxu0 %v342_v29  ;;  %881 = vmatprep.mubr.msk.f32.mxu0 %vm1108_vm0, %v1107_v1 }
  0x71   :  { %851 = vmatprep.subr.mxu0 %v1107_v1  ;;  %884 = vmatprep.subr.mxu1 %v1107_v1 }
  0x72   :  { %852 = vmatpush3.msra.mxu0 %v341_v31 }
  0x73   :  { %853 = vmatprep.subr.mxu0 %v1107_v1 }
  0x74   :  { %854 = vmatpush3.msra.mxu0 %v340_v33  ;;  %v705_v33 = vld [vmem:[%s1301_s4] ss:$0 sm:$0xff] }
  0x75   :  { %855 = vmatprep.subr.mxu0 %v1107_v1 }
  0x76   :  { %856 = vmatpush3.msra.mxu0 %v339_v35 }
  0x77   :  { %857 = vmatprep.subr.mxu0 %v1107_v1 }
  0x78   :  { %858 = vmatpush3.msra.mxu0 %v338_v37  ;;  %v706_v37 = vld [vmem:[%s1302_s5] ss:$0 sm:$0xff] }
  0x79   :  { %859 = vmatprep.subr.mxu0 %v1107_v1 }
  0x7a   :  { %860 = vmatpush3.msra.mxu0 %v337_v39 }
  0x7b   :  { %861 = vmatprep.subr.mxu0 %v1107_v1 }
  0x7c   :  { %862 = vmatpush3.msra.mxu0 %v336_v40  ;;  %v533_v40 = vmul.f32 1.442695, %v532_v34 }
  0x7d   :  { %863 = vmatprep.subr.mxu0 %v1107_v1 }
  0x7e   :  { %864 = vmatpush3.msra.mxu0 %v335_v41 }
  0x7f   :  { %865 = vmatprep.subr.mxu0 %v1107_v1 }
  0x80   :  { %866 = vmatpush3.msra.mxu0 %v334_v42 }
  0x81   :  { %867 = vmatprep.subr.mxu0 %v1107_v1 }
  0x82   :  { %868 = vmatpush3.msra.mxu0 %v333_v43  ;;  %v536_v43 = vlaneseq }
  0x83   :  { %869 = vmatprep.subr.mxu0 %v1107_v1 }
  0x84   :  { %870 = vmatpush3.msra.mxu0 %v332_v44  ;;  %v537_v44 = vshrl.u32 %v536_v43, 7 }
  0x85   :  { %871 = vmatprep.subr.mxu0 %v1107_v1 }
  0x86   :  { %872 = vmatpush3.msra.mxu0 %v331_v45  ;;  %v538_v45 = vsub.s32 0, %v537_v44 }
  0x87   :  { %873 = vmatprep.subr.mxu0 %v1107_v1 }
  0x88   :  { %874 = vmatpush3.msra.mxu0 %v330_v46 }
  0x89   :  { %875 = vmatprep.subr.mxu0 %v1107_v1 }
  0x8a   :  { %876 = vmatpush3.msra.mxu0 %v329_v47 }
  0x8b   :  { %877 = vmatprep.subr.mxu0 %v1107_v1 }
  0x8c   :  { %878 = vmatpush3.msra.mxu0 %v328_v48 }
  0x8d   :  { %879 = vmatprep.subr.mxu0 %v1107_v1 }
  0x8e   :  { %880 = vmatpush3.msra.mxu0 %v327_v49 }
  0x8f   :  { %882 = vmatmul.mubr.f32.vlgmr.msra.gmra.mxu0 %v326_v50  ;;  %919 = vmatprep.subr.mxu0 %v1107_v1 }
  0x90   :  { %921 = vmatprep.mubr.msk.f32.mxu0 %vm1108_vm0, %v1107_v1 }
 0x12f   :  { %v220_v53 = vpop.f32.mrf.mxu0 }
 0x130   :  { %847 = vmatmul.mubr.f32.vlgmr.msra.gmra.mxu1 %v220_v53 }
 0x131   :  { %v813_v55 = vpop.f32.mrf.mxu0  ;;  %885 = vmatpush3.msra.mxu1 %v358_v52  ;;  %916 = vmatprep.mubr.msk.f32.mxu1 %vm1108_vm0, %v1107_v1 }
 0x132   :  { %886 = vmatprep.subr.mxu1 %v1107_v1 }
 0x133   :  { %887 = vmatpush3.msra.mxu1 %v357_v54 }
 0x134   :  { %888 = vmatprep.subr.mxu1 %v1107_v1 }
 0x135   :  { %889 = vmatpush3.msra.mxu1 %v356_v56 }
 0x136   :  { %890 = vmatprep.subr.mxu1 %v1107_v1 }
 0x137   :  { %891 = vmatpush3.msra.mxu1 %v355_v57 }
 0x138   :  { %892 = vmatprep.subr.mxu1 %v1107_v1 }
 0x139   :  { %893 = vmatpush3.msra.mxu1 %v354_v58 }
 0x13a   :  { %894 = vmatprep.subr.mxu1 %v1107_v1 }
 0x13b   :  { %895 = vmatpush3.msra.mxu1 %v353_v59 }
 0x13c   :  { %896 = vmatprep.subr.mxu1 %v1107_v1 }
 0x13d   :  { %897 = vmatpush3.msra.mxu1 %v352_v60 }
 0x13e   :  { %898 = vmatprep.subr.mxu1 %v1107_v1 }
 0x13f   :  { %899 = vmatpush3.msra.mxu1 %v351_v61 }
 0x140   :  { %900 = vmatprep.subr.mxu1 %v1107_v1 }
 0x141   :  { %901 = vmatpush3.msra.mxu1 %v350_v62 }
 0x142   :  { %902 = vmatprep.subr.mxu1 %v1107_v1 }
 0x143   :  { %903 = vmatpush3.msra.mxu1 %v349_v63 }
 0x144   :  { %904 = vmatprep.subr.mxu1 %v1107_v1 }
 0x145   :  { %905 = vmatpush3.msra.mxu1 %v348_v0 }
 0x146   :  { %906 = vmatprep.subr.mxu1 %v1107_v1 }
 0x147   :  { %907 = vmatpush3.msra.mxu1 %v347_v2 }
 0x148   :  { %908 = vmatprep.subr.mxu1 %v1107_v1 }
 0x149   :  { %909 = vmatpush3.msra.mxu1 %v346_v3 }
 0x14a   :  { %910 = vmatprep.subr.mxu1 %v1107_v1 }
 0x14b   :  { %911 = vmatpush3.msra.mxu1 %v345_v4 }
 0x14c   :  { %912 = vmatprep.subr.mxu1 %v1107_v1 }
 0x14d   :  { %913 = vmatpush3.msra.mxu1 %v344_v5 }
 0x14e   :  { %914 = vmatprep.subr.mxu1 %v1107_v1  ;;  %v1109_v1 = vmov 0  }
 0x14f   :  { %v427_v7 = vpop.f32.mrf.mxu0  ;;  %915 = vmatpush3.msra.mxu1 %v343_v6  ;;  %942 = vset.pattern.permute.xlu0 %v1109_v1 }
 0x150   :  { %917 = vmatmul.mubr.f32.vlgmr.msra.gmra.mxu1 %v427_v7 }
 0x151   :  { %v883_v8 = vpop.f32.mrf.mxu0 }
 0x1f0   :  { %v290_v9 = vpop.f32.mrf.mxu1 }
 0x1f2   :  { %v848_v10 = vpop.f32.mrf.mxu1 }
 0x210   :  { %v497_v11 = vpop.f32.mrf.mxu1 }
 0x211   :  { %501 = vadd.xlane.f32.xlu0 %v497_v11 }
 0x212   :  { %v918_v12 = vpop.f32.mrf.mxu1 }
 0x215   :  { %294 = vadd.xlane.f32.xlu0 %v290_v9 }
 0x29a   :  { %v502_v13 = vpop.xlane.xlu0 %501 }
 0x29b   :  { %v503_v14 = vmul.f32 0.0078125, %v502_v13 }
 0x29d   :  { %v504_v15 = vsub.f32 %v497_v11, %v503_v14 }
 0x29e   :  { %v295_v16 = vpop.xlane.xlu0 %294 }
 0x29f   :  { %v297_v17 = vmul.f32 0.0078125, %v295_v16  ;;  %v505_v18 = vmul.f32 %v504_v15, %v504_v15 }
 0x2a1   :  { %v298_v19 = vsub.f32 %v290_v9, %v297_v17  ;;  %506 = vadd.xlane.f32.xlu1 %v505_v18 }
 0x2a3   :  { %v299_v20 = vmul.f32 %v298_v19, %v298_v19 }
 0x2a5   :  { %300 = vadd.xlane.f32.xlu1 %v299_v20 }
 0x32a   :  { %v507_v21 = vpop.xlane.xlu1 %506 }
 0x32b   :  { %v508_v22 = vmul.f32 0.0078125, %v507_v21 }
 0x32d   :  { %v509_v23 = vadd.f32 1e-05, %v508_v22 }
 0x32e   :  { %v301_v24 = vpop.xlane.xlu1 %300 }
 0x32f   :  { %943 = vrsqrt.f32 %v509_v23  ;;  %v302_v25 = vmul.f32 0.0078125, %v301_v24 }
 0x331   :  { %v303_v26 = vadd.f32 1e-05, %v302_v25 }
 0x333   :  { %945 = vrsqrt.f32 %v303_v26 }
 0x334   :  { %947 = vpow2.f32 %v533_v40 }
 0x33c   :  { %v944_v27 = vpop.eup %943 }
 0x33d   :  { %v511_v29 = vmul.f32 %v944_v27, %v504_v15 }
 0x33f   :  { %v518_v31 = vmul.f32 %v707_v28, %v511_v29 }
 0x340   :  { %v946_v32 = vpop.eup %945 }
 0x341   :  { %v525_v35 = vadd.f32 %v708_v30, %v518_v31  ;;  %v305_v36 = vmul.f32 %v946_v32, %v298_v19  ;;  %v948_v46 = vpop.eup %947 }
 0x342   :  { %v539_v47 = vrot.slane %v948_v46, %v538_v45 }
 0x343   :  { %v526_v38 = vmul.f32 %v525_v35, %v525_v35  ;;  %v312_v39 = vmul.f32 %v705_v33, %v305_v36 }
 0x345   :  { %527 = vadd.xlane.f32.xlu0 %v526_v38  ;;  %v319_v41 = vadd.f32 %v706_v37, %v312_v39 }
 0x347   :  { %v320_v42 = vmul.f32 %v319_v41, %v319_v41 }
 0x349   :  { %321 = vadd.xlane.f32.xlu1 %v320_v42 }
 0x35b   :  { %541 = vperm.xlu0 %942, %v539_v47  }
 0x3ce   :  { %v528_v48 = vpop.xlane.xlu0 %527 }
 0x3cf   :  { %v529_v49 = vmax.f32 %v528_v48, 1e-24 }
 0x3d1   :  { %949 = vrsqrt.f32 %v529_v49 }
 0x3d2   :  { %v322_v50 = vpop.xlane.xlu1 %321 }
 0x3d3   :  { %v323_v51 = vmax.f32 %v322_v50, 1e-24 }
 0x3d5   :  { %951 = vrsqrt.f32 %v323_v51 }
 0x3d6   :  { %v542_v55 = vpop.permute.xlu0 %541 }
 0x3de   :  { %v950_v52 = vpop.eup %949 }
 0x3df   :  { %v531_v53 = vmul.f32 %v950_v52, %v525_v35 }
 0x3e1   :  { %920 = vmatpush3.xpose.msra.mxu0 %v531_v53 }
 0x3e2   :  { %v952_v54 = vpop.eup %951 }
 0x3e3   :  { %v325_v56 = vmul.f32 %v952_v54, %v319_v41 }
 0x3e5   :  { %v544_v57 = vmul.f32 %v542_v55, %v325_v56 }
 0x3e7   :  { %922 = vmatmul.mubr.f32.vlgmr.msra.gmra.mxu0 %v544_v57  ;;  %v615_v58 = vmul.f32 %v544_v57, %v531_v53 }
 0x4a7   :  { %v611_v59 = vpop.f32.mrf.mxu0 }
 0x4a8   :  { %v619_v60 = vsel %vm618_vm1, %v611_v59, -inf }
 0x4a9   :  { %620 = vmax.xlane.f32.xlu1 %v619_v60  ;;  %v923_v61 = vpop.f32.mrf.mxu0  ;;  %v631_v62 = vrot.slane %v619_v60, 4 }
 0x4ab   :  { %v632_v63 = vmax.f32 %v619_v60, %v631_v62 }
 0x4ad   :  { %v633_v0 = vrot.slane %v632_v63, 2 }
 0x4af   :  { %v634_v2 = vmax.f32 %v632_v63, %v633_v0 }
 0x4b1   :  { %v635_v3 = vrot.slane %v634_v2, 1 }
 0x4b3   :  { %v636_v4 = vmax.f32 %v634_v2, %v635_v3 }
 0x4b5   :  { %v637_v5 = vsub.f32 %v611_v59, %v636_v4 }
 0x4b7   :  { %v638_v6 = vmul.f32 1.442695, %v637_v5 }
 0x4b9   :  { %953 = vpow2.f32 %v638_v6 }
 0x4c6   :  { %v954_v7 = vpop.eup %953 }
 0x4c7   :  { %v640_v8 = vsel %vm618_vm1, %v954_v7, 0.0 }
 0x4c8   :  { %v641_v9 = vrot.slane %v640_v8, 4 }
 0x4ca   :  { %v642_v10 = vadd.f32 %v641_v9, %v640_v8 }
 0x4cc   :  { %v643_v11 = vrot.slane %v642_v10, 2 }
 0x4ce   :  { %v644_v12 = vadd.f32 %v643_v11, %v642_v10 }
 0x4d0   :  { %v645_v13 = vrot.slane %v644_v12, 1 }
 0x4d2   :  { %v646_v14 = vadd.f32 %v645_v13, %v644_v12 }
 0x4d4   :  { %955 = vlog2.f32 %v646_v14 }
 0x4e1   :  { %v956_v18 = vpop.eup %955 }
 0x4e2   :  { %v648_v1 = vmul.f32 0.6931472, %v956_v18 }
 0x4e4   :  { %v649_v21 = vadd.f32 %v648_v1, %v636_v4 }
 0x4e6   :  { %v662_v22 = vsel %vm661_vm2, %v649_v21, 0.0 }
 0x532   :  { %v621_v15 = vpop.xlane.xlu1 %620 }
 0x533   :  { %v622_v16 = vsub.f32 %v611_v59, %v621_v15 }
 0x535   :  { %v623_v17 = vmul.f32 1.442695, %v622_v16 }
 0x537   :  { %957 = vpow2.f32 %v623_v17 }
 0x544   :  { %v958_v19 = vpop.eup %957 }
 0x545   :  { %v625_v20 = vsel %vm618_vm1, %v958_v19, 0.0 }
 0x546   :  { %626 = vadd.xlane.f32.xlu1 %v625_v20 }
 0x54a   :  { %616 = vadd.xlane.f32.xlu1 %v615_v58 }
 0x54e   :  { %663 = vadd.xlane.f32.xlu1 %v662_v22 }
 0x5cf   :  { %v627_v23 = vpop.xlane.xlu1 %626 }
 0x5d0   :  { %959 = vlog2.f32 %v627_v23 }
 0x5d3   :  { %v617_v28 = vpop.xlane.xlu1 %616 }
 0x5d4   :  { %v673_v29 = vsel %vm650_vm3, %v617_v28, 0.0 }
 0x5d7   :  { %v664_v30 = vpop.xlane.xlu1 %663 }
 0x5d8   :  { %v665_v31 = vrot.slane %v664_v30, 4 }
 0x5da   :  { %v666_v32 = vadd.f32 %v665_v31, %v664_v30 }
 0x5dc   :  { %v667_v33 = vrot.slane %v666_v32, 2 }
 0x5dd   :  { %v960_v24 = vpop.eup %959 }
 0x5de   :  { %v629_v25 = vmul.f32 0.6931472, %v960_v24  ;;  %v668_v38 = vadd.f32 %v667_v33, %v666_v32 }
 0x5e0   :  { %v630_v26 = vadd.f32 %v629_v25, %v621_v15  ;;  %v669_v43 = vrot.slane %v668_v38, 1 }
 0x5e2   :  { %v651_v27 = vsel %vm650_vm3, %v630_v26, 0.0  ;;  %v670_v48 = vadd.f32 %v669_v43, %v668_v38 }
 0x5e3   :  { %652 = vadd.xlane.f32.xlu1 %v651_v27 }
 0x5e7   :  { %674 = vadd.xlane.f32.xlu1 %v673_v29 }
 0x66c   :  { %v653_v34 = vpop.xlane.xlu1 %652 }
 0x66d   :  { %v654_v35 = vrot.slane %v653_v34, 4 }
 0x66f   :  { %v655_v36 = vadd.f32 %v654_v35, %v653_v34 }
 0x670   :  { %v675_v37 = vpop.xlane.xlu1 %674 }
 0x671   :  { %v656_v39 = vrot.slane %v655_v36, 2  ;;  %v676_v40 = vrot.slane %v675_v37, 4 }
 0x673   :  { %v677_v41 = vadd.f32 %v676_v40, %v675_v37  ;;  %v657_v42 = vadd.f32 %v656_v39, %v655_v36 }
 0x675   :  { %v678_v44 = vrot.slane %v677_v41, 2  ;;  %v658_v45 = vrot.slane %v657_v42, 1 }
 0x677   :  { %v679_v46 = vadd.f32 %v678_v44, %v677_v41  ;;  %v659_v47 = vadd.f32 %v658_v45, %v657_v42 }
 0x679   :  { %924 = vpush %v659_v47  ;;  %v680_v49 = vrot.slane %v679_v46, 1 }
 0x67a   :  { %926 = vpush %v670_v48 }
 0x67b   :  { %v681_v50 = vadd.f32 %v680_v49, %v679_v46 }
 0x67d   :  { %928 = vpush %v681_v50 }
 0x6aa   :  { %s925_s4 = spop %924 }
 0x6ab   :  { %s927_s5 = spop %926 }
 0x6ac   :  { %s672_s9 = sadd.f32 %s927_s5, %s925_s4 }
 0x6ae   :  { %s929_s8 = spop %928 }
 0x6af   :  { %s683_s1 = smul.f32 2.0, %s929_s8 }
 0x6b1   :  { %s684_s13 = ssub.f32 %s672_s9, %s683_s1 }
 0x6b3   :  { %s685_s14 = smul.f32 0.0625, %s684_s13 }
 0x6b5   :  { %687 = sst [smem:[#allocation14]] %s685_s14 }
 0x6b6   :  { %695 = dma.smem_to_hbm %s1110_s15, 16, %s1308_s11, [#allocation5]  }
 0x6b7   :  { %1097 = dma.done.wait [#allocation5], 16  }
 0x6b8   :  { %1098 = vsyncadd [#allocation5], 4294967280 }
 0x6b9   :  { %699 = sfence }
 0x6ba   :  { %700 = vsyncpa [#allocation4], 1 }
 0x6bb   :  { %701 = vsyncpa [#allocation7], 1 }
 0x6bc   :  { %702 = vsyncpa [#allocation10], 1 }
 0x6bd   :  { %703 = vsyncpa [#allocation13], 1 }
 0x6be   :  { %704 = vsyncpa [#allocation5], 1 }

</bundles_post_ra>
